<compile_context>
chip_gen: v7x
topology: tpu7x:2x2x1
jax: 0.10.0
libtpu: 0.0.40
codegen_flags: <defaults>
</compile_context>

<pallas_src>
import numpy as np
import jax
import jax.numpy as jnp
from jax.experimental import pallas as pl
from jax.experimental.pallas import tpu as pltpu


def _round_up(v, m):
    return ((v + m - 1) // m) * m


def _make_kernel(c_in, use_mxu):
    def kernel(w_ref, b_ref, x_ref, m_ref, o_ref):
        x = x_ref[...].astype(jnp.float32)          # (C_in , block_hw)
        w = w_ref[...]                              # (C_out, C_in)  f32
        if use_mxu:
            y = jnp.dot(w, x, preferred_element_type=jnp.float32)
        else:
            # Tiny channels: unrolled broadcast-FMA on the VPU instead of paying
            # MXU push/pop latency for a (C_out, C_in) x (C_in, blk) matmul.
            y = w[:, 0:1] * x[0:1, :]
            for c in range(1, c_in):
                y = y + w[:, c:c + 1] * x[c:c + 1, :]
        o_ref[...] = (y + b_ref[...]) * m_ref[...].astype(jnp.float32)
    return kernel


def _choose_tiling(HW, C_in, C_out, x_bytes, m_bytes, budget_bytes=12 << 20):
    """Padded spatial length + lane tile, keeping double-buffered per-step VMEM
    well under the scoped limit on every generation (v5e 16 MiB default scoped,
    v7x 64 MiB physical). Tile is always a multiple of 128 (lane-dense stores)."""
    HWp = _round_up(HW, 128)

    def fits(blk):
        per_step = 2 * blk * (x_bytes * C_in + (m_bytes + 4) * C_out)
        return per_step <= budget_bytes

    candidates = ([HWp] if HWp <= 4096 else []) + [2048, 1024, 512, 256, 128]
    for blk in candidates:
        if blk <= HWp and HWp % blk == 0 and fits(blk):
            return HWp, blk
    return HWp, 128


def sparse_layer_forward(x, weight, bias, mask):
    """x: (N, C_in, H, W); weight: (C_out, C_in, 1, 1); bias: (C_out,);
    mask: broadcastable against the conv output (N, C_out, H, W)."""
    assert x.ndim == 4 and weight.ndim == 4 and mask.ndim == 4
    N, C_in, H, W = x.shape
    C_out = weight.shape[0]
    assert weight.shape[1] == C_in and weight.shape[2:] == (1, 1)
    # PyTorch broadcast of `conv(x) * mask`: mask dim 0 <-> N, dim 1 <-> C_out.
    assert mask.shape[0] in (1, N) and mask.shape[1] in (1, C_out), (
        "mask is not broadcastable against the conv output (N, C_out, H, W)")
    assert mask.shape[2] in (1, H) and mask.shape[3] in (1, W)

    mask_b = jnp.broadcast_to(mask, (N, C_out, H, W))

    HW = H * W
    HWp, block_hw = _choose_tiling(HW, C_in, C_out,
                                   x.dtype.itemsize, mask.dtype.itemsize)

    x3 = x.reshape(N, C_in, HW)          # free view of NCHW
    m3 = mask_b.reshape(N, C_out, HW)    # free view
    if HWp != HW:
        x3 = jnp.pad(x3, ((0, 0), (0, 0), (0, HWp - HW)))
        m3 = jnp.pad(m3, ((0, 0), (0, 0), (0, HWp - HW)))

    w2 = weight.reshape(C_out, C_in).astype(jnp.float32)
    b2 = bias.reshape(C_out, 1).astype(jnp.float32)

    use_mxu = min(C_in, C_out) >= 16
    kernel = _make_kernel(C_in, use_mxu)

    out3 = pl.pallas_call(
        kernel,
        out_shape=jax.ShapeDtypeStruct((N, C_out, HWp), jnp.float32),
        grid_spec=pltpu.PrefetchScalarGridSpec(
            num_scalar_prefetch=0,
            grid=(N, HWp // block_hw),
            in_specs=[
                pl.BlockSpec((C_out, C_in), lambda n, j: (0, 0)),             # weight (resident)
                pl.BlockSpec((C_out, 1), lambda n, j: (0, 0)),                # bias (resident)
                pl.BlockSpec((None, C_in, block_hw), lambda n, j: (n, 0, j)),   # x tile
                pl.BlockSpec((None, C_out, block_hw), lambda n, j: (n, 0, j)),  # mask tile
            ],
            out_specs=pl.BlockSpec((None, C_out, block_hw), lambda n, j: (n, 0, j)),
        ),
        compiler_params=pltpu.CompilerParams(
            dimension_semantics=("parallel", "parallel"),
            vmem_limit_bytes=32 * 1024 * 1024),
    )(w2, b2, x3, m3)

    if HWp != HW:
        out3 = out3[:, :, :HW]
    return out3.reshape(N, C_out, H, W)


def make_sparse_mask(key, layer_shape, sparse_ratio):
    """Replicates get_sparse_tensor / to_sparsity_ratio deterministically in-script."""
    C_out, C_in, kH, kW = layer_shape
    rm = np.asarray(
        jax.random.normal(key, (C_out, C_in * kH * kW), dtype=jnp.float32))
    srt = np.sort(np.abs(rm.ravel()))
    idx = round(len(srt) * (1 - sparse_ratio))
    breakpoint_val = srt[min(idx, len(srt) - 1)]
    s = np.sign(rm) * np.maximum(np.abs(rm) - breakpoint_val, 0.0)
    mask = np.where(s == 0, 0.0, 1.0).astype(np.float32)
    return (jnp.asarray(s.reshape(layer_shape).astype(np.float32)),
            jnp.asarray(mask.reshape(layer_shape)))


if __name__ == "__main__":
    key = jax.random.PRNGKey(0)
    k_x, k_w, k_b, k_s = jax.random.split(key, 4)

    # layer_shape = (C_out, C_in, H, W); the PyTorch broadcast conv(x) * mask
    # forces N == layer_shape[0] (and C_in == C_out) for the test shapes.
    layer_shape = (4, 4, 16, 16)
    sparse_ratio = 0.5
    C_out, C_in, H, W = layer_shape
    N = C_out

    x = jax.random.normal(k_x, (N, C_in, H, W), dtype=jnp.float32)

    # Conv2d(C_in, C_out, kernel_size=1) parameters, PyTorch-style uniform init.
    bound = 1.0 / np.sqrt(C_in)
    weight = jax.random.uniform(k_w, (C_out, C_in, 1, 1),
                                minval=-bound, maxval=bound, dtype=jnp.float32)
    bias = jax.random.uniform(k_b, (C_out,),
                              minval=-bound, maxval=bound, dtype=jnp.float32)

    _, mask_f32 = make_sparse_mask(k_s, layer_shape, sparse_ratio)
    # Mask entries are exactly {0,1}: store the parameter bf16 (lossless) to
    # halve its HBM stream into the kernel.
    mask = mask_f32.astype(jnp.bfloat16)

    out = jax.block_until_ready(sparse_layer_forward(x, weight, bias, mask))

    # Pure-JAX reference: 1x1 conv (NCHW) + bias, then mask multiply.
    ref = (jnp.einsum('oc,nchw->nohw', weight.reshape(C_out, C_in), x,
                      precision=jax.lax.Precision.HIGHEST)
           + bias.reshape(1, C_out, 1, 1)) * mask_f32
    np.testing.assert_allclose(np.asarray(out), np.asarray(ref),
                               rtol=1e-5, atol=1e-5)
    print("KERNEL_OK")
</pallas_src>

<mosaic_0001>
module attributes {stable_mosaic.version = 11 : i64} {
  func.func @kernel(%arg0: i32, %arg1: i32, %arg2: memref<4x4xf32, #tpu.memory_space<vmem>>, %arg3: memref<4x1xf32, #tpu.memory_space<vmem>>, %arg4: memref<1x4x256xf32, #tpu.memory_space<vmem>>, %arg5: memref<1x4x256xbf16, #tpu.memory_space<vmem>>, %arg6: memref<1x4x256xf32, #tpu.memory_space<vmem>>) attributes {dimension_semantics = [#tpu.dimension_semantics<parallel>, #tpu.dimension_semantics<parallel>], iteration_bounds = array<i64: 4, 1>, scalar_prefetch = 0 : i64, scratch_operands = 0 : i64, tpu.core_type = #tpu.core_type<tc>, window_params = [{pipeline_mode = #tpu.pipeline_mode<synchronous>, transform_indices = @transform_0, window_bounds = array<i64: 4, 4>}, {pipeline_mode = #tpu.pipeline_mode<synchronous>, transform_indices = @transform_1, window_bounds = array<i64: 4, 1>}, {transform_indices = @transform_2, window_bounds = array<i64: 1, 4, 256>}, {transform_indices = @transform_3, window_bounds = array<i64: 1, 4, 256>}, {transform_indices = @transform_4, window_bounds = array<i64: 1, 4, 256>}]} {
    %c0 = arith.constant 0 : index
    %c0_0 = arith.constant 0 : index
    %c0_1 = arith.constant 0 : index
    %0 = vector.load %arg4[%c0, %c0_0, %c0_1] : memref<1x4x256xf32, #tpu.memory_space<vmem>>, vector<1x4x256xf32>
    %1 = vector.shape_cast %0 : vector<1x4x256xf32> to vector<4x256xf32>
    %c0_2 = arith.constant 0 : index
    %c0_3 = arith.constant 0 : index
    %2 = vector.load %arg2[%c0_2, %c0_3] : memref<4x4xf32, #tpu.memory_space<vmem>>, vector<4x4xf32>
    %3 = vector.extract_strided_slice %2 {offsets = [0, 0], sizes = [4, 1], strides = [1, 1]} : vector<4x4xf32> to vector<4x1xf32>
    %4 = vector.extract_strided_slice %1 {offsets = [0, 0], sizes = [1, 256], strides = [1, 1]} : vector<4x256xf32> to vector<1x256xf32>
    %5 = vector.broadcast %3 : vector<4x1xf32> to vector<4x256xf32>
    %6 = vector.broadcast %4 : vector<1x256xf32> to vector<4x256xf32>
    %7 = arith.mulf %5, %6 : vector<4x256xf32>
    %8 = vector.extract_strided_slice %2 {offsets = [0, 1], sizes = [4, 1], strides = [1, 1]} : vector<4x4xf32> to vector<4x1xf32>
    %9 = vector.extract_strided_slice %1 {offsets = [1, 0], sizes = [1, 256], strides = [1, 1]} : vector<4x256xf32> to vector<1x256xf32>
    %10 = vector.broadcast %8 : vector<4x1xf32> to vector<4x256xf32>
    %11 = vector.broadcast %9 : vector<1x256xf32> to vector<4x256xf32>
    %12 = arith.mulf %10, %11 : vector<4x256xf32>
    %13 = arith.addf %7, %12 : vector<4x256xf32>
    %14 = vector.extract_strided_slice %2 {offsets = [0, 2], sizes = [4, 1], strides = [1, 1]} : vector<4x4xf32> to vector<4x1xf32>
    %15 = vector.extract_strided_slice %1 {offsets = [2, 0], sizes = [1, 256], strides = [1, 1]} : vector<4x256xf32> to vector<1x256xf32>
    %16 = vector.broadcast %14 : vector<4x1xf32> to vector<4x256xf32>
    %17 = vector.broadcast %15 : vector<1x256xf32> to vector<4x256xf32>
    %18 = arith.mulf %16, %17 : vector<4x256xf32>
    %19 = arith.addf %13, %18 : vector<4x256xf32>
    %20 = vector.extract_strided_slice %2 {offsets = [0, 3], sizes = [4, 1], strides = [1, 1]} : vector<4x4xf32> to vector<4x1xf32>
    %21 = vector.extract_strided_slice %1 {offsets = [3, 0], sizes = [1, 256], strides = [1, 1]} : vector<4x256xf32> to vector<1x256xf32>
    %22 = vector.broadcast %20 : vector<4x1xf32> to vector<4x256xf32>
    %23 = vector.broadcast %21 : vector<1x256xf32> to vector<4x256xf32>
    %24 = arith.mulf %22, %23 : vector<4x256xf32>
    %25 = arith.addf %19, %24 : vector<4x256xf32>
    %c0_4 = arith.constant 0 : index
    %c0_5 = arith.constant 0 : index
    %26 = vector.load %arg3[%c0_4, %c0_5] : memref<4x1xf32, #tpu.memory_space<vmem>>, vector<4x1xf32>
    %27 = vector.broadcast %26 : vector<4x1xf32> to vector<4x256xf32>
    %28 = arith.addf %25, %27 : vector<4x256xf32>
    %c0_6 = arith.constant 0 : index
    %c0_7 = arith.constant 0 : index
    %c0_8 = arith.constant 0 : index
    %29 = vector.load %arg5[%c0_6, %c0_7, %c0_8] : memref<1x4x256xbf16, #tpu.memory_space<vmem>>, vector<1x4x256xbf16>
    %30 = vector.shape_cast %29 : vector<1x4x256xbf16> to vector<4x256xbf16>
    %31 = arith.extf %30 : vector<4x256xbf16> to vector<4x256xf32>
    %32 = arith.mulf %28, %31 : vector<4x256xf32>
    %c0_9 = arith.constant 0 : index
    %c0_10 = arith.constant 0 : index
    %c0_11 = arith.constant 0 : index
    %33 = vector.load %arg6[%c0_9, %c0_10, %c0_11] : memref<1x4x256xf32, #tpu.memory_space<vmem>>, vector<1x4x256xf32>
    %34 = vector.shape_cast %33 : vector<1x4x256xf32> to vector<4x256xf32>
    %35 = vector.shape_cast %32 : vector<4x256xf32> to vector<1x4x256xf32>
    tpu.vector_store %arg6[%c0_9, %c0_10, %c0_11], %35 {strides = array<i32>} : memref<1x4x256xf32, #tpu.memory_space<vmem>>, vector<1x4x256xf32>,
    return
  }
  func.func @transform_0(%arg0: i32, %arg1: i32) -> (i32, i32) {
    %c0_i32 = arith.constant 0 : i32
    %c0_i32_0 = arith.constant 0 : i32
    %c0_i32_1 = arith.constant 0 : i32
    return %c0_i32, %c0_i32_0 : i32, i32
  }
  func.func @transform_1(%arg0: i32, %arg1: i32) -> (i32, i32) {
    %c0_i32 = arith.constant 0 : i32
    %c0_i32_0 = arith.constant 0 : i32
    %c0_i32_1 = arith.constant 0 : i32
    return %c0_i32, %c0_i32_0 : i32, i32
  }
  func.func @transform_2(%arg0: i32, %arg1: i32) -> (i32, i32, i32) {
    %c0_i32 = arith.constant 0 : i32
    %c0_i32_0 = arith.constant 0 : i32
    return %arg0, %c0_i32, %arg1 : i32, i32, i32
  }
  func.func @transform_3(%arg0: i32, %arg1: i32) -> (i32, i32, i32) {
    %c0_i32 = arith.constant 0 : i32
    %c0_i32_0 = arith.constant 0 : i32
    return %arg0, %c0_i32, %arg1 : i32, i32, i32
  }
  func.func @transform_4(%arg0: i32, %arg1: i32) -> (i32, i32, i32) {
    %c0_i32 = arith.constant 0 : i32
    %c0_i32_0 = arith.constant 0 : i32
    return %arg0, %c0_i32, %arg1 : i32, i32, i32
  }
}

</mosaic_0001>

<bundles_post_ra>
// kernel: tpu_custom_call.1
= control target key start
LH: loop header
LB: loop body
LE: loop exit
PB: predicated region body
PF: predicated region fallthrough
CT: control target
= control target key end

     0   :  { %9 = vsyncpa [#allocation3], 0  ;;  %s1049_s0 = inlined_call_operand.hbm [shape: f32[4,4], index: 0, kind: input, shape index: {}]   ;;  %s1050_s1 = inlined_call_operand.vmem [shape: f32[4,1], index: 1, kind: input, shape index: {}]   ;;  %s1051_s2 = inlined_call_operand.hbm [shape: f32[4,4,256], index: 2, kind: input, shape index: {}]   ;;  %s1052_s3 = inlined_call_operand.vmem [shape: bf16[4,4,256], index: 3, kind: input, shape index: {}]   ;;  %s1053_s4 = inlined_call_operand.hbm [shape: f32[4,4,256], index: 4, kind: output, shape index: {}]  }
   0x1   :  { %10 = vsyncpa [#allocation6], 0 }
   0x2   :  { %12 = vsyncpa [#allocation6 + $0x1], 0 }
   0x3   :  { %13 = vsyncpa [#allocation4], 0 }
   0x4   :  { %15 = vsyncpa [#allocation4 + $0x1], 0  ;;  %s823_s15 = smov 0   ;;  %s825_s16 = smov 0  }
   0x5   :  { %s827_s17 = smov 0   ;;  %s829_s18 = smov 0  }
   0x6   :  { %s831_s19 = smov 0   ;;  %s833_s20 = smov 0  }
   0x7 LB: > { %s540_s21 = sadd.s32 4294967295, %s789_s20   ;;  %s541_s22 = sadd.s32 4294967294, %s789_s20   ;;  %s789_s20 = sphi %s833_s20, %s21_s20   ;;  %s785_s19 = sphi %s831_s19, %s1077_s19   ;;  %s781_s18 = sphi %s829_s18, %s1076_s18   ;;  %s777_s17 = sphi %s827_s17, %s1075_s17   ;;  %s773_s16 = sphi %s825_s16, %s1074_s16   ;;  %s769_s15 = sphi %s823_s15, %s1073_s15  }
   0x8   : > { %p97_p0 = scmp.ne.s32.totalorder %s773_s16, %s769_s15  ;;  %p857_p1 = scmp.eq.s32.totalorder %s540_s21, 0 }
   0x9   : > { %p861_p2 = scmp.eq.s32.totalorder %s540_s21, 3  ;;  %p157_p3 = scmp.eq.s32.totalorder %s541_s22, 3 }
   0xa   : > { %s1058_s23 = scalar_select %p857_p1, 1, 0 }
   0xb   : > { %s1059_s24 = scalar_select %p861_p2, 1, 0 }
   0xc   : > { %p867_p4 = por %p857_p1, %p97_p0  ;;  %p542_p5 = scmp.ge.s32.totalorder %s789_s20, 1 }
   0xd   : > { %p872_p6 = por %p157_p3, %p97_p0  ;;  %p164_p7 = scmp.lt.s32.totalorder %s789_s20, 5 }
   0xe   : > { %s1060_s25 = scalar_select %p867_p4, 1, 0 }
   0xf   : > { %s1061_s26 = scalar_select %p872_p6, 1, 0 }
  0x10   : > { %p877_p8 = pnand %p542_p5, %p164_p7  ;;  %s791_s28 = smov [#allocation2]  }
  0x11   : > { %s177_s29 = sshll.u32 %s791_s28, 4  ;;  %s33_s5 = sadd.s32 1, %s785_s19  ;;  %s178_s29 = int_to_ptr.vmem [resolvable:$true] %s177_s29 }
  0x12   : > { %s1062_s27 = scalar_select %p877_p8, 1, 0 }
  0x13   : > { %p570_p9 = pneg %p877_p8  ;;  %s84_s6 = sadd.s32 1, %s777_s17 }
  0x14   : > { %p891_p11 = scmp.ge.s32.totalorder %s33_s5, 4  ;;  %s645_s10 = scalar_lea.hbm %s1049_s0, 64 }
  0x15   : > { %p885_p10 = pnand %p570_p9, %p857_p1  ;;  %p646_p12 = scmp.ne.s32.totalorder %s1049_s0, %s645_s10 }
  0x16   : > { %s1064_s7 = scalar_select %p891_p11, 1, 0 }
  0x17   : > { %p647_p13 = pneg %p885_p10  ;;  %p652_p5 = scmp.lt.u32.totalorder %s645_s10, %s1049_s0 }
  0x19   : > { %p648_p0 = pnand %p647_p13, %p646_p12 }
  0x1b   : > { %p649_p3 = pneg %p648_p0 }
  0x1d   : > { %p654_p7 = pnand %p652_p5, %p649_p3 }
  0x1f   : > { %657 = shalt.err (!%p654_p7)
}
  0x20   : > { %s658_s21 = scalar_lea.vmem %s178_s29, 64  ;;  %p666_p1 = scmp.lt.s32.totalorder %s178_s29, %s178_s29 }
  0x21   : > { %p659_p9 = scmp.ne.s32.totalorder %s178_s29, %s658_s21  ;;  %p667_p8 = scmp.lt.s32.totalorder %s658_s21, %s658_s21 }
  0x23   : > { %p661_p6 = pnand %p659_p9, %p647_p13  ;;  %p668_p2 = por %p667_p8, %p666_p1 }
  0x25   : > { %p662_p4 = pneg %p661_p6 }
  0x27   : > { %p669_p11 = pnand %p668_p2, %p662_p4 }
  0x29   : > { %672 = shalt.err (!%p669_p11)
}
  0x2a   : > { %573 = dma.hbm_to_vmem [thread:$0]  (!%p885_p10), %s1049_s0, 64, %s178_s29, [#allocation3]  }
  0x2b   : > { %p1065_p1 = scmp.ne.s32.totalorder %s1064_s7, 0  ;;  %p91_p2 = scmp.ne.s32.totalorder %s777_s17, %s773_s16 }
  0x2c   : > { %p92_p4 = scmp.eq.s32.totalorder %s789_s20, 0  ;;  %p583_p6 = scmp.lt.s32.totalorder %s789_s20, 4 }
  0x2d   : > { %s1079_s5 = smov (%p1065_p1, %s33_s5), 0  ;;  %p1066_p12 = scmp.ne.s32.totalorder %s1059_s24, 0 }
  0x2e   : > { %s79_s30 = ssub.s32 %s785_s19, %s1079_s5  ;;  %p93_p11 = por %p92_p4, %p91_p2 }
  0x2f   : > { %p82_p8 = scmp.eq.s32.totalorder %s79_s30, 0  ;;  %p923_p13 = por %p1066_p12, %p91_p2 }
  0x30   : > { %s191_s9 = sand.u32 1, %s777_s17   ;;  %s559_s7 = sshll.u32 %s785_s19, 7 }
  0x31   : > { %s931_s10 = scalar_select %p82_p8, %s777_s17, %s84_s6  }
  0x32   : > { %s545_s29 = sshll.u32 %s191_s9, 3  ;;  %s937_s13 = scalar_lea.hbm %s1051_s2, %s559_s7 }
  0x33   : > { %s195_s24 = scalar_lea.vmem [#allocation5], %s545_s29  ;;  %p941_p10 = pnand %p583_p6, %p93_p11 }
  0x34   : > { %s205_s14 = sshll.u32 %s195_s24, 4  ;;  %s192_s6 = scalar_lea.sflag [#allocation6], %s191_s9  ;;  %s939_s14 = int_to_ptr.vmem [resolvable:$true] %s205_s14 }
  0x35   : > { %s673_s22 = scalar_lea.hbm %s937_s13, 128  ;;  %p675_p3 = pneg %p941_p10 }
  0x36   : > { %p674_p0 = scmp.ne.s32.totalorder %s937_s13, %s673_s22  ;;  %s678_s29 = scalar_lea.hbm %s1051_s2, 512 }
  0x37   : > { %p679_p9 = scmp.lt.u32.totalorder %s937_s13, %s1051_s2  ;;  %p680_p1 = scmp.lt.u32.totalorder %s678_s29, %s673_s22 }
  0x38   : > { %p676_p5 = pnand %p675_p3, %p674_p0  ;;  %p682_p4 = scmp.lt.u32.totalorder %s673_s22, %s937_s13 }
  0x39   : > { %p681_p2 = por %p680_p1, %p679_p9 }
  0x3a   : > { %p677_p7 = pneg %p676_p5 }
  0x3b   : > { %p683_p6 = por %p682_p4, %p681_p2 }
  0x3d   : > { %p684_p8 = pnand %p683_p6, %p677_p7 }
  0x3f   : > { %687 = shalt.err (!%p684_p8)
}
  0x40   : > { %s688_s9 = scalar_lea.vmem %s939_s14, 128  ;;  %s792_s12 = smov [#allocation5]  }
  0x41   : > { %p689_p11 = scmp.ne.s32.totalorder %s939_s14, %s688_s9  ;;  %s693_s24 = sshll.u32 %s792_s12, 4  ;;  %s694_s24 = int_to_ptr.vmem [resolvable:$false] %s693_s24 }
  0x42   : > { %s695_s28 = scalar_lea.vmem %s694_s24, 256  ;;  %p696_p5 = scmp.lt.s32.totalorder %s939_s14, %s694_s24 }
  0x43   : > { %p691_p12 = pnand %p689_p11, %p675_p3  ;;  %p697_p9 = scmp.lt.s32.totalorder %s695_s28, %s688_s9 }
  0x45   : > { %p692_p0 = pneg %p691_p12  ;;  %p698_p1 = por %p697_p9, %p696_p5 }
  0x47   : > { %p699_p2 = pnand %p698_p1, %p692_p0 }
  0x49   : > { %702 = shalt.err (!%p699_p2)
}
  0x4a   : > { %577 = dma.hbm_to_vmem [thread:$0]  (!%p941_p10), %s937_s13, 128, %s939_s14, %s192_s6  }
  0x4b   : > { %p1069_p7 = scmp.ne.s32.totalorder %s1062_s27, 0 }
  0x4c   : > { %p1070_p3 = scmp.ne.s32.totalorder (!%p1069_p7), %s1058_s23, 0 }
  0x4d   : > { %227 = sbr.rel (%p1069_p7) target bundleno = 252 (0xfc), region = 36 }
  0x54   : > { %756 = dma.done.wait (%p1070_p3), [#allocation3], 64  }
  0x55   : > { %758 = vsyncadd (%p1070_p3), [#allocation3], 4294967232  ;;  %s977_s22 = sand.u32 1, %s773_s16   ;;  %p1071_p10 = scmp.ne.s32.totalorder %s1060_s25, 0 }
  0x56   : > { %s550_s21 = sshll.u32 %s977_s22, 3  ;;  %s234_s30 = scalar_lea.sflag [#allocation6], %s977_s22 }
  0x57   : > { %s237_s13 = scalar_lea.vmem [#allocation5], %s550_s21 }
  0x58   : > { %760 = dma.done.wait (%p1071_p10), %s234_s30, 128  }
  0x59   : > { %762 = vsyncadd (%p1071_p10), %s234_s30, 4294967168  ;;  %v793_v0 = vmov 0   ;;  %v794_v1 = vmov 2   ;;  %v284_v2 = vld [vmem:[#allocation2] sm:$0xf]  ;;  %v795_v3 = vmov 1   ;;  %v291_v6 = vlaneseq }
  0x5a   : > { %639 = vset.pattern.permute.xlu0 %v793_v0  ;;  %641 = vset.pattern.permute.xlu1 %v794_v1  ;;  %v796_v4 = vmov 3   ;;  %v389_v5 = vld [vmem:[%s1050_s1] sm:$0xf]  ;;  %p273_p4 = scmp.lt.s32.totalorder %s781_s18, 3  ;;  %v283_v12 = vld [vmem:[%s237_s13] sm:$0xff]  ;;  %s561_s11 = sshll.u32 %s781_s18, 7 }
  0x5b   : > { %287 = vperm.xlu0 %639, %v284_v2   ;;  %338 = vperm.xlu1 %641, %v284_v2   ;;  %v292_v7 = vshrl.u32 %v291_v6, 7  ;;  %s270_s9 = scalar_lea.vmem [#allocation7], %s550_s21  ;;  %s1001_s30 = scalar_lea.hbm %s1053_s4, %s561_s11 }
  0x5c   : > { %s274_s25 = scalar_select %p273_p4, %s781_s18, 3 }
  0x5d   : > { %v293_v8 = vsub.s32 0, %v292_v7  ;;  %v297_v9 = vsub.s32 4, %v292_v7  ;;  %v317_v10 = vsub.s32 1, %v292_v7  ;;  %v321_v11 = vsub.s32 5, %v292_v7  ;;  %s426_s12 = sshll.u32 %s270_s9, 4  ;;  %s410_s13 = scalar_lea.sflag [#allocation4], %s977_s22  ;;  %s1003_s12 = int_to_ptr.vmem [resolvable:$true] %s426_s12 }
  0x5e   : > { %v343_v13 = vsub.s32 2, %v292_v7  ;;  %v347_v14 = vsub.s32 6, %v292_v7  ;;  %v369_v15 = vsub.s32 3, %v292_v7  ;;  %v373_v16 = vsub.s32 7, %v292_v7  ;;  %s560_s14 = sshll.u32 %s274_s25, 2  ;;  %s703_s23 = scalar_lea.vmem %s1003_s12, 128 }
  0x5f   : > { %640 = vset.pattern.permute.xlu0 %v795_v3  ;;  %642 = vset.pattern.permute.xlu1 %v796_v4  ;;  %v294_v17 = vrot.slane %v283_v12, %v293_v8  ;;  %v298_v18 = vrot.slane %v283_v12, %v297_v9  ;;  %v318_v19 = vrot.slane %v283_v12, %v317_v10  ;;  %s280_s7 = scalar_lea.vmem %s1052_s3, %s560_s14  ;;  %p704_p6 = scmp.ne.s32.totalorder %s1003_s12, %s703_s23 }
  0x60   : > { %312 = vperm.xlu0 %640, %v284_v2   ;;  %364 = vperm.xlu1 %642, %v284_v2   ;;  %v322_v20 = vrot.slane %v283_v12, %v321_v11  ;;  %v344_v21 = vrot.slane %v283_v12, %v343_v13  ;;  %v348_v22 = vrot.slane %v283_v12, %v347_v14  ;;  %v397_v35 = vld [vmem:[%s280_s7] sm:$0xf]  ;;  %s797_s18 = smov [#allocation7]  }
  0x61   : > { %v370_v25 = vrot.slane %v283_v12, %v369_v15  ;;  %v374_v26 = vrot.slane %v283_v12, %v373_v16  ;;  %v304_v27 = vrot.slane %v294_v17, %v293_v8  ;;  %v308_v28 = vrot.slane %v298_v18, %v293_v8  ;;  %p705_p8 = pnand %p704_p6, %p923_p13  ;;  %s707_s21 = sshll.u32 %s797_s18, 4  ;;  %s708_s21 = int_to_ptr.vmem [resolvable:$false] %s707_s21 }
  0x62   : > { %v328_v29 = vrot.slane %v318_v19, %v317_v10  ;;  %v332_v30 = vrot.slane %v322_v20, %v317_v10  ;;  %v354_v31 = vrot.slane %v344_v21, %v343_v13  ;;  %v358_v32 = vrot.slane %v348_v22, %v343_v13  ;;  %s709_s27 = scalar_lea.vmem %s708_s21, 256  ;;  %p710_p12 = scmp.lt.s32.totalorder %s1003_s12, %s708_s21 }
  0x63   : > { %v380_v33 = vrot.slane %v370_v25, %v369_v15  ;;  %v384_v34 = vrot.slane %v374_v26, %v369_v15  ;;  %v398_v44 = vunpack.c.l.bf16 %v397_v35  ;;  %p706_p11 = pneg %p705_p8  ;;  %p711_p0 = scmp.lt.s32.totalorder %s709_s27, %s703_s23 }
  0x64   : > { %643 = vset.pattern.permute.xlu1 %v793_v0  ;;  %644 = vset.pattern.permute.xlu0 %v793_v0 }
  0x65   : > { %392 = vperm.xlu1 %643, %v389_v5   ;;  %v400_v52 = vcombine.high %v398_v44, %v398_v44  ;;  %p712_p5 = por %p711_p0, %p710_p12 }
  0x67   : > { %p713_p9 = pnand %p712_p5, %p706_p11 }
  0xda   : > { %v288_v23 = vpop.permute.xlu0 %287  ;;  %v339_v24 = vpop.permute.xlu1 %338 }
  0xdb   : > { %v309_v38 = vmul.f32 %v304_v27, %v288_v23  ;;  %v310_v39 = vmul.f32 %v308_v28, %v288_v23  ;;  %v359_v42 = vmul.f32 %v354_v31, %v339_v24  ;;  %v360_v43 = vmul.f32 %v358_v32, %v339_v24 }
  0xdf   : > { %v313_v36 = vpop.permute.xlu0 %312  ;;  %v365_v37 = vpop.permute.xlu1 %364 }
  0xe0   : > { %v333_v40 = vmul.f32 %v328_v29, %v313_v36  ;;  %v334_v41 = vmul.f32 %v332_v30, %v313_v36  ;;  %v385_v47 = vmul.f32 %v380_v33, %v365_v37  ;;  %v386_v48 = vmul.f32 %v384_v34, %v365_v37 }
  0xe2   : > { %v335_v45 = vadd.f32 %v333_v40, %v309_v38  ;;  %v336_v46 = vadd.f32 %v334_v41, %v310_v39 }
  0xe4   : > { %v361_v49 = vadd.f32 %v359_v42, %v335_v45  ;;  %v362_v50 = vadd.f32 %v360_v43, %v336_v46  ;;  %v393_v51 = vpop.permute.xlu1 %392 }
  0xe6   : > { %v387_v53 = vadd.f32 %v385_v47, %v361_v49  ;;  %v388_v54 = vadd.f32 %v386_v48, %v362_v50 }
  0xe8   : > { %v395_v55 = vadd.f32 %v393_v51, %v387_v53  ;;  %v396_v56 = vadd.f32 %v393_v51, %v388_v54 }
  0xea   : > { %v402_v57 = vmul.f32 %v398_v44, %v395_v55  ;;  %v403_v58 = vmul.f32 %v400_v52, %v396_v56 }
  0xec   : > { %v406_v59 = vcombine.low %v402_v57, %v403_v58 }
  0xee   : > { %408 = vst [vmem:[%s270_s9] sm:$0xff] %v406_v59 }
  0xef   : > { %716 = shalt.err (!%p713_p9)
}
  0xf0   : > { %s717_s22 = scalar_lea.hbm %s1001_s30, 128  ;;  %s721_s6 = scalar_lea.hbm %s1053_s4, 512 }
  0xf1   : > { %p718_p1 = scmp.ne.s32.totalorder %s1001_s30, %s717_s22  ;;  %p722_p3 = scmp.lt.u32.totalorder %s1001_s30, %s1053_s4 }
  0xf2   : > { %p723_p10 = scmp.lt.u32.totalorder %s721_s6, %s717_s22  ;;  %p725_p6 = scmp.lt.u32.totalorder %s717_s22, %s1001_s30 }
  0xf3   : > { %p719_p2 = pnand %p718_p1, %p923_p13 }
  0xf4   : > { %p724_p4 = por %p723_p10, %p722_p3 }
  0xf5   : > { %p720_p7 = pneg %p719_p2 }
  0xf6   : > { %p726_p8 = por %p725_p6, %p724_p4 }
  0xf8   : > { %p727_p11 = pnand %p726_p8, %p720_p7 }
  0xfa   : > { %730 = shalt.err (!%p727_p11)
}
  0xfb   : > { %568 = dma.vmem_to_hbm [thread:$0]  (%p923_p13), %s1003_s12, 128, %s1001_s30, %s410_s13  }
  0xfc PF: > { %p585_p12 = scmp.ge.s32.totalorder %s789_s20, 2  ;;  %s438_s11 = sand.u32 1, %s769_s15  }
  0xfd   : > { %p1072_p0 = scmp.ne.s32.totalorder %s1061_s26, 0  ;;  %s439_s9 = scalar_lea.sflag [#allocation4], %s438_s11 }
  0xff   : > { %p579_p5 = pnand %p585_p12, %p1072_p0 }
 0x101   : > { %764 = dma.done.wait (!%p579_p5), %s439_s9, 128  }
 0x102   : > { %766 = vsyncadd (!%p579_p5), %s439_s9, 4294967168  ;;  %s21_s20 = sadd.s32 1, %s789_s20   ;;  %s1073_s15 = smov %s773_s16 }
 0x103   : > { %p18_p9 = scmp.ge.s32.totalorder %s21_s20, 6   ;;  %s1074_s16 = smov %s777_s17 }
 0x104   : > { %s1075_s17 = smov %s931_s10  ;;  %s1076_s18 = smov %s785_s19 }
 0x105   : > { %s1077_s19 = smov %s1079_s5  ;;  %20 = sbr.rel (!%p18_p9) target bundleno = 7 (0x7), region = 89 }
 0x10c   :  { %444 = vsyncpa [#allocation3], 1 }
 0x10d   :  { %446 = vsyncpa [#allocation3 + $0x1], 1 }
 0x10e   :  { %447 = vsyncpa [#allocation6], 1 }
 0x10f   :  { %449 = vsyncpa [#allocation6 + $0x1], 1 }
 0x110   :  { %450 = vsyncpa [#allocation4], 1 }
 0x111   :  { %452 = vsyncpa [#allocation4 + $0x1], 1 }

</bundles_post_ra>
